<compile_context>
chip_gen: v7x
topology: tpu7x:2x2x1
jax: 0.10.0
libtpu: 0.0.40
codegen_flags: <defaults>
</compile_context>

<pallas_src>
import jax
import jax.numpy as jnp
from jax.experimental import pallas as pl
from jax.experimental.pallas import tpu as pltpu

LN_EPS = 1e-5  # nn.LayerNorm default


# ----------------------------------------------------------------------------- kernel
def _cls_head_kernel(x_ref, w_ref, b_ref, o_ref):
    # x_ref: (TB, D)   input feature tile
    # w_ref: (D, TN)   gamma-folded Linear weight tile (bf16, resident)
    # b_ref: (1, TN)   folded bias tile (beta @ W + b), f32, zero-padded
    # o_ref: (TB, TN)  logits tile (lane-dense)
    x = x_ref[...].astype(jnp.float32)

    # LayerNorm statistics over the feature dim (biased variance, as torch).
    # var = E[x^2] - mean^2 and xn = x*inv - mean*inv keep only x / xn live.
    mean = jnp.mean(x, axis=-1, keepdims=True)
    mean_sq = jnp.mean(x * x, axis=-1, keepdims=True)
    inv = jax.lax.rsqrt((mean_sq - mean * mean) + LN_EPS)
    xn = (x * inv - mean * inv).astype(w_ref.dtype)   # gamma/beta folded into w/b

    # Linear head on the MXU: bf16 operands, f32 accumulation.
    logits = jnp.dot(xn, w_ref[...], preferred_element_type=jnp.float32)
    o_ref[...] = (logits + b_ref[...]).astype(o_ref.dtype)


# ----------------------------------------------------------------------------- helpers
def _round_up(n, m):
    return ((n + m - 1) // m) * m


def _cdiv(a, b):
    return -(-a // b)


def _class_tiling(num_classes):
    """Lane-dense class padding and class tile size (TN multiple of 128)."""
    cpad = _round_up(num_classes, 128)
    if cpad <= 2048:
        return cpad, cpad          # single class tile for all practical heads
    tn = 1024
    return _round_up(cpad, tn), tn


def _vmem_capacity_bytes():
    try:
        return int(pltpu.get_tpu_info().vmem_capacity_bytes)
    except Exception:
        return 128 * 1024 * 1024   # v5e/v6e default if the query is unavailable


def _resident_spec(block_shape, index_map, single_buffer):
    """BlockSpec for (near-)grid-invariant operands; single-buffer when possible."""
    if single_buffer:
        try:
            return pl.BlockSpec(block_shape, index_map, pipeline_mode=pl.Buffered(1))
        except TypeError:
            pass  # older JAX without pipeline_mode: fall back to default buffering
    return pl.BlockSpec(block_shape, index_map)


def _choose_tb(B, D, TN, x_itemsize, w_itemsize, vmem_cap, n_class_tiles):
    """Batch tile: as large as the generation's VMEM allows, after subtracting the
    resident weight and accounting for the f32 LN temporaries."""
    w_bufs = 1 if n_class_tiles == 1 else 2
    weight_bytes = w_bufs * (D * TN * w_itemsize + TN * 4)
    usable = (3 * vmem_cap) // 4 - weight_bytes - 8 * 1024 * 1024   # compiler margin
    usable = max(usable, 4 * 1024 * 1024)
    per_row = (2 * D * x_itemsize     # double-buffered x tile (real input dtype)
               + 2 * TN * 4           # double-buffered out tile (f32 worst case)
               + 2 * D * 4            # f32 LN temporaries (x_f32, xn)
               + TN * 4)              # f32 logits before the output cast
    tb = usable // per_row
    tb = max(8, (tb // 8) * 8)
    tb = min(tb, 2048)
    tb = min(tb, _round_up(B, 8))
    # Keep >= 2 batch steps so both v7x TensorCores get work (neutral on 1-TC parts).
    if n_class_tiles == 1 and B >= 16:
        tb = min(tb, _round_up(_cdiv(B, 2), 8))
    return int(tb)


# ----------------------------------------------------------------------------- wrapper
def fold_classification_head_params(ln_gamma, ln_beta, head_w, head_b,
                                     weight_dtype=jnp.bfloat16):
    """One-time (init-time) fold of the LayerNorm affine into the Linear head:
        logits = LN_stats(x) @ (gamma[:,None] * W) + (beta @ W + b)
    Also pads classes to the lane-dense width and casts the weight to bf16 so the
    MXU runs its native path.  Call ONCE and reuse the result across forwards."""
    D, C = head_w.shape
    gamma = ln_gamma.astype(jnp.float32)
    beta = ln_beta.astype(jnp.float32)
    w32 = head_w.astype(jnp.float32)
    w_fold = gamma[:, None] * w32                         # (D, C)
    b_fold = beta @ w32 + head_b.astype(jnp.float32)      # (C,)

    cpad, _ = _class_tiling(C)
    w_fold = jnp.pad(w_fold, ((0, 0), (0, cpad - C))).astype(weight_dtype)
    b_fold = jnp.pad(b_fold, (0, cpad - C)).reshape(1, cpad).astype(jnp.float32)
    return w_fold, b_fold, C


def classification_head_apply(x, w_fold, b_fold, num_classes):
    """Per-call forward: LayerNorm statistics + folded Linear head."""
    B, D = x.shape
    Dw, Cpad = w_fold.shape
    assert Dw == D
    cpad_chk, TN = _class_tiling(num_classes)
    assert cpad_chk == Cpad, "folded params don't match num_classes"
    nc = Cpad // TN

    vmem_cap = _vmem_capacity_bytes()
    TB = _choose_tb(B, D, TN, x.dtype.itemsize, w_fold.dtype.itemsize, vmem_cap, nc)
    nb = _cdiv(B, TB)

    out_dtype = x.dtype
    w_bufs = 1 if nc == 1 else 2
    est = (2 * TB * D * x.dtype.itemsize              # streamed x tiles
           + 2 * TB * TN * out_dtype.itemsize         # streamed out tiles
           + w_bufs * (D * TN * w_fold.dtype.itemsize + TN * 4)   # resident w/b
           + 2 * TB * D * 4 + TB * TN * 4)            # f32 temporaries
    vmem_limit = int(min(est + 8 * 1024 * 1024, (3 * vmem_cap) // 4))
    vmem_limit = max(vmem_limit, 16 * 1024 * 1024)

    out_padded = pl.pallas_call(
        _cls_head_kernel,
        out_shape=jax.ShapeDtypeStruct((B, Cpad), out_dtype),
        grid_spec=pl.GridSpec(
            grid=(nb, nc),
            in_specs=[
                pl.BlockSpec((TB, D), lambda i, j: (i, 0)),                 # x tile
                _resident_spec((D, TN), lambda i, j: (0, j), nc == 1),      # weight
                _resident_spec((1, TN), lambda i, j: (0, j), nc == 1),      # bias
            ],
            out_specs=pl.BlockSpec((TB, TN), lambda i, j: (i, j)),
        ),
        compiler_params=pltpu.CompilerParams(
            dimension_semantics=("parallel", "parallel"),
            vmem_limit_bytes=vmem_limit,
        ),
    )(x, w_fold, b_fold)

    return out_padded[:, :num_classes] if Cpad != num_classes else out_padded


def classification_head(x, ln_gamma, ln_beta, head_w, head_b):
    """Convenience one-shot path.  NOTE: the parameter fold below runs on device;
    for repeated forwards, call fold_classification_head_params once and reuse."""
    w_fold, b_fold, n_cls = fold_classification_head_params(ln_gamma, ln_beta,
                                                            head_w, head_b)
    return classification_head_apply(x, w_fold, b_fold, n_cls)


# ----------------------------------------------------------------------------- reference
def reference(x, ln_gamma, ln_beta, head_w, head_b):
    mean = jnp.mean(x, axis=-1, keepdims=True)
    var = jnp.mean((x - mean) ** 2, axis=-1, keepdims=True)
    xn = (x - mean) / jnp.sqrt(var + LN_EPS)
    xn = xn * ln_gamma + ln_beta
    return xn @ head_w + head_b


if __name__ == "__main__":
    # Small shapes consistent with the module's forward: batch of CLS-token features.
    batch = 8
    embed_dim = 32
    num_classes = 10

    key = jax.random.PRNGKey(0)
    kx, kg, kb, kw, kbh = jax.random.split(key, 5)

    x = jax.random.normal(kx, (batch, embed_dim), dtype=jnp.float32)
    # Deterministic synthetic parameters (not a checkpoint load).
    ln_gamma = 1.0 + 0.1 * jax.random.normal(kg, (embed_dim,), dtype=jnp.float32)
    ln_beta = 0.1 * jax.random.normal(kb, (embed_dim,), dtype=jnp.float32)
    head_w = 0.05 * jax.random.normal(kw, (embed_dim, num_classes), dtype=jnp.float32)
    head_b = 0.05 * jax.random.normal(kbh, (num_classes,), dtype=jnp.float32)

    # Init-time fold (done once, reused for every forward call).
    w_fold, b_fold, n_cls = fold_classification_head_params(ln_gamma, ln_beta,
                                                            head_w, head_b)
    w_fold, b_fold = jax.block_until_ready((w_fold, b_fold))

    out = classification_head_apply(x, w_fold, b_fold, n_cls)
    out = jax.block_until_ready(out)

    ref = reference(x, ln_gamma, ln_beta, head_w, head_b)
    assert out.shape == (batch, num_classes)
    # bf16 weights on the MXU -> small relative deltas vs. the f32 reference.
    assert jnp.allclose(out, ref, atol=1e-2, rtol=1e-2), "mismatch vs reference"

    print("KERNEL_OK")
</pallas_src>

<mosaic_0001>
module attributes {stable_mosaic.version = 11 : i64} {
  func.func @_cls_head_kernel(%arg0: i32, %arg1: i32, %arg2: memref<8x32xf32, #tpu.memory_space<vmem>>, %arg3: memref<32x128xbf16, #tpu.memory_space<vmem>>, %arg4: memref<1x128xf32, #tpu.memory_space<vmem>>, %arg5: memref<8x128xf32, #tpu.memory_space<vmem>>) attributes {dimension_semantics = [#tpu.dimension_semantics<parallel>, #tpu.dimension_semantics<parallel>], iteration_bounds = array<i64: 1, 1>, scalar_prefetch = 0 : i64, scratch_operands = 0 : i64, tpu.core_type = #tpu.core_type<tc>, window_params = [{transform_indices = @transform_0, window_bounds = array<i64: 8, 32>}, {pipeline_mode = #tpu.pipeline_mode<synchronous>, transform_indices = @transform_1, window_bounds = array<i64: 32, 128>}, {pipeline_mode = #tpu.pipeline_mode<synchronous>, transform_indices = @transform_2, window_bounds = array<i64: 1, 128>}, {transform_indices = @transform_3, window_bounds = array<i64: 8, 128>}]} {
    %c0 = arith.constant 0 : index
    %c0_0 = arith.constant 0 : index
    %0 = vector.load %arg2[%c0, %c0_0] : memref<8x32xf32, #tpu.memory_space<vmem>>, vector<8x32xf32>
    %cst = arith.constant dense<0.000000e+00> : vector<8xf32>
    %1 = vector.multi_reduction <add>, %0, %cst [1] : vector<8x32xf32> to vector<8xf32>
    %2 = vector.shape_cast %1 : vector<8xf32> to vector<8x1xf32>
    %cst_1 = arith.constant 3.200000e+01 : f32
    %3 = vector.broadcast %cst_1 : f32 to vector<8x1xf32>
    %4 = arith.divf %2, %3 : vector<8x1xf32>
    %5 = arith.mulf %0, %0 : vector<8x32xf32>
    %cst_2 = arith.constant dense<0.000000e+00> : vector<8xf32>
    %6 = vector.multi_reduction <add>, %5, %cst_2 [1] : vector<8x32xf32> to vector<8xf32>
    %7 = vector.shape_cast %6 : vector<8xf32> to vector<8x1xf32>
    %cst_3 = arith.constant 3.200000e+01 : f32
    %8 = vector.broadcast %cst_3 : f32 to vector<8x1xf32>
    %9 = arith.divf %7, %8 : vector<8x1xf32>
    %10 = arith.mulf %4, %4 : vector<8x1xf32>
    %11 = arith.subf %9, %10 : vector<8x1xf32>
    %cst_4 = arith.constant 9.99999974E-6 : f32
    %12 = vector.broadcast %cst_4 : f32 to vector<8x1xf32>
    %13 = arith.addf %11, %12 : vector<8x1xf32>
    %14 = math.rsqrt %13 : vector<8x1xf32>
    %15 = vector.broadcast %14 : vector<8x1xf32> to vector<8x32xf32>
    %16 = arith.mulf %0, %15 : vector<8x32xf32>
    %17 = arith.mulf %4, %14 : vector<8x1xf32>
    %18 = vector.broadcast %17 : vector<8x1xf32> to vector<8x32xf32>
    %19 = arith.subf %16, %18 : vector<8x32xf32>
    %20 = arith.truncf %19 : vector<8x32xf32> to vector<8x32xbf16>
    %c0_5 = arith.constant 0 : index
    %c0_6 = arith.constant 0 : index
    %21 = vector.load %arg3[%c0_5, %c0_6] : memref<32x128xbf16, #tpu.memory_space<vmem>>, vector<32x128xbf16>
    %cst_7 = arith.constant dense<0.000000e+00> : vector<8x128xf32>
    %22 = tpu.matmul %20, %21, %cst_7 {dimension_numbers = #tpu.dot_dimension_numbers<[1], [0], [0], [1], [0, 0, 1, 1], [], []>} : vector<8x32xbf16>, vector<32x128xbf16>, vector<8x128xf32> -> vector<8x128xf32>
    %c0_8 = arith.constant 0 : index
    %c0_9 = arith.constant 0 : index
    %23 = vector.load %arg4[%c0_8, %c0_9] : memref<1x128xf32, #tpu.memory_space<vmem>>, vector<1x128xf32>
    %24 = vector.broadcast %23 : vector<1x128xf32> to vector<8x128xf32>
    %25 = arith.addf %22, %24 : vector<8x128xf32>
    %c0_10 = arith.constant 0 : index
    %c0_11 = arith.constant 0 : index
    %26 = vector.load %arg5[%c0_10, %c0_11] : memref<8x128xf32, #tpu.memory_space<vmem>>, vector<8x128xf32>
    tpu.vector_store %arg5[%c0_10, %c0_11], %25 {strides = array<i32>} : memref<8x128xf32, #tpu.memory_space<vmem>>, vector<8x128xf32>,
    return
  }
  func.func @transform_0(%arg0: i32, %arg1: i32) -> (i32, i32) {
    %c0_i32 = arith.constant 0 : i32
    %c0_i32_0 = arith.constant 0 : i32
    return %arg0, %c0_i32 : i32, i32
  }
  func.func @transform_1(%arg0: i32, %arg1: i32) -> (i32, i32) {
    %c0_i32 = arith.constant 0 : i32
    %c0_i32_0 = arith.constant 0 : i32
    return %c0_i32, %arg1 : i32, i32
  }
  func.func @transform_2(%arg0: i32, %arg1: i32) -> (i32, i32) {
    %c0_i32 = arith.constant 0 : i32
    %c0_i32_0 = arith.constant 0 : i32
    return %c0_i32, %arg1 : i32, i32
  }
  func.func @transform_3(%arg0: i32, %arg1: i32) -> (i32, i32) {
    %c0_i32 = arith.constant 0 : i32
    return %arg0, %arg1 : i32, i32
  }
}

</mosaic_0001>

<bundles_post_ra>
// kernel: tpu_custom_call.1
= control target key start
LH: loop header
LB: loop body
LE: loop exit
PB: predicated region body
PF: predicated region fallthrough
CT: control target
= control target key end

     0   :  { %8 = vsyncpa [#allocation3], 0  ;;  %s319_s0 = inlined_call_operand.hbm [shape: f32[8,32], index: 0, kind: input, shape index: {}]   ;;  %s320_s1 = inlined_call_operand.hbm [shape: bf16[32,128], index: 1, kind: input, shape index: {}]   ;;  %s321_s2 = inlined_call_operand.vmem [shape: f32[1,128], index: 2, kind: input, shape index: {}]   ;;  %s322_s3 = inlined_call_operand.hbm [shape: f32[8,128], index: 3, kind: output, shape index: {}]  }
   0x1   :  { %9 = vsyncpa [#allocation6], 0 }
   0x2   :  { %10 = vsyncpa [#allocation4], 0  ;;  %s243_s12 = smov [#allocation2]   ;;  %s244_s14 = smov [#allocation5]  }
   0x3   :  { %s17_s13 = sshll.u32 %s243_s12, 4  ;;  %s26_s15 = sshll.u32 %s244_s14, 4  ;;  %s18_s13 = int_to_ptr.vmem [resolvable:$true] %s17_s13  ;;  %s270_s15 = int_to_ptr.vmem [resolvable:$true] %s26_s15 }
   0x4   :  { %s171_s18 = scalar_lea.hbm %s319_s0, 128 }
   0x5   :  { %p172_p0 = scmp.ne.s32.totalorder %s319_s0, %s171_s18  ;;  %p175_p1 = scmp.lt.u32.totalorder %s171_s18, %s319_s0 }
   0x7   :  { %p177_p2 = pnand %p175_p1, %p172_p0 }
   0x9   :  { %180 = shalt.err (!%p177_p2)
}
   0xa   :  { %s181_s23 = scalar_lea.vmem %s18_s13, 128  ;;  %p186_p4 = scmp.lt.s32.totalorder %s18_s13, %s18_s13 }
   0xb   :  { %p182_p3 = scmp.ne.s32.totalorder %s18_s13, %s181_s23  ;;  %p187_p5 = scmp.lt.s32.totalorder %s181_s23, %s181_s23 }
   0xd   :  { %p188_p6 = por %p187_p5, %p186_p4 }
   0xf   :  { %p189_p7 = pnand %p188_p6, %p182_p3 }
  0x11   :  { %192 = shalt.err (!%p189_p7)
}
  0x12   :  { %20 = dma.hbm_to_vmem [thread:$0]  %s319_s0, 128, %s18_s13, [#allocation3]  }
  0x13   :  { %s193_s28 = scalar_lea.hbm %s320_s1, 256 }
  0x14   :  { %p194_p8 = scmp.ne.s32.totalorder %s320_s1, %s193_s28  ;;  %p197_p9 = scmp.lt.u32.totalorder %s193_s28, %s320_s1 }
  0x16   :  { %p199_p10 = pnand %p197_p9, %p194_p8 }
  0x18   :  { %202 = shalt.err (!%p199_p10)
}
  0x19   :  { %s203_s6 = scalar_lea.vmem %s270_s15, 256  ;;  %p208_p12 = scmp.lt.s32.totalorder %s270_s15, %s270_s15 }
  0x1a   :  { %p204_p11 = scmp.ne.s32.totalorder %s270_s15, %s203_s6  ;;  %p209_p13 = scmp.lt.s32.totalorder %s203_s6, %s203_s6 }
  0x1c   :  { %p210_p0 = por %p209_p13, %p208_p12 }
  0x1e   :  { %p211_p1 = pnand %p210_p0, %p204_p11 }
  0x20   :  { %214 = shalt.err (!%p211_p1)
}
  0x21   :  { %s245_s0 = smov 64   ;;  %s246_s7 = smov 4  }
  0x22   :  { %32 = dma.hbm_to_vmem [thread:$0]  %s320_s1, 256, %s270_s15, [#allocation6], %s245_s0, %s245_s0, %s246_s7  }
  0x23   :  { %237 = dma.done.wait [#allocation3], 128  }
  0x24   :  { %238 = vsyncadd [#allocation3], 4294967168 }
  0x25   :  { %239 = dma.done.wait [#allocation6], 256  }
  0x26   :  { %240 = vsyncadd [#allocation6], 4294967040  ;;  %vm43_vm0 = vcmask 261120   ;;  %v42_v0 = vld [vmem:[#allocation2] sm:$0xff]  ;;  %v167_v4 = vld [vmem:[#allocation5] sm:$0xff]   ;;  %v247_v5 = vmov 0.0  }
  0x27   :  { %v44_v1 = vsel %vm43_vm0, %v42_v0, 0.0  ;;  %v49_v2 = vmul.f32 %v42_v0, %v42_v0  ;;  %152 = vmatprep.subr.bf16.mxu0 %v247_v5  ;;  %vm248_vm1 = vmmov 0   ;;  %v168_v6 = vld [vmem:[#allocation5 + $0x8] sm:$0xff]   ;;  %v145_v19 = vld [vmem:[%s321_s2] ss:$0 sm:$0xff]  ;;  %s249_s11 = smov [#allocation7]  }
  0x28   :  { %45 = vadd.xlane.f32.xlu0 %v44_v1  ;;  %156 = vmatprep.mubr.msk.bf16.mxu0 %vm248_vm1, %v247_v5  ;;  %s135_s12 = sshll.u32 %s249_s11, 4  ;;  %s136_s12 = int_to_ptr.vmem [resolvable:$true] %s135_s12 }
  0x29   :  { %v50_v3 = vsel %vm43_vm0, %v49_v2, 0.0  ;;  %153 = vmatpush3.bf16.msra.mxu0 %v167_v4  ;;  %s215_s13 = scalar_lea.vmem %s136_s12, 128  ;;  %p220_p3 = scmp.lt.s32.totalorder %s136_s12, %s136_s12 }
  0x2a   :  { %154 = vmatprep.subr.bf16.mxu0 %v247_v5  ;;  %p216_p2 = scmp.ne.s32.totalorder %s136_s12, %s215_s13  ;;  %p221_p4 = scmp.lt.s32.totalorder %s215_s13, %s215_s13 }
  0x2c   :  { %51 = vadd.xlane.f32.xlu0 %v50_v3  ;;  %p222_p5 = por %p221_p4, %p220_p3 }
  0x2d   :  { %155 = vmatpush3.bf16.msra.mxu0 %v168_v6 }
  0x2e   :  { %p223_p6 = pnand %p222_p5, %p216_p2 }
  0xb5   :  { %v46_v7 = vpop.xlane.xlu0 %45 }
  0xb6   :  { %v48_v8 = vmul.f32 0.03125, %v46_v7 }
  0xb8   :  { %v54_v10 = vmul.f32 %v48_v8, %v48_v8 }
  0xb9   :  { %v52_v9 = vpop.xlane.xlu0 %51 }
  0xba   :  { %v53_v11 = vmul.f32 0.03125, %v52_v9 }
  0xbc   :  { %v55_v12 = vsub.f32 %v53_v11, %v54_v10 }
  0xbe   :  { %v56_v13 = vadd.f32 1e-05, %v55_v12 }
  0xc0   :  { %169 = vrsqrt.f32 %v56_v13 }
  0xca   :  { %v170_v14 = vpop.eup %169 }
  0xcb   :  { %v58_v15 = vmul.f32 %v170_v14, %v42_v0  ;;  %v59_v16 = vmul.f32 %v170_v14, %v48_v8 }
  0xcd   :  { %v60_v17 = vsub.f32 %v58_v15, %v59_v16 }
  0xcf   :  { %v61_v18 = vpack.c.bf16 %v60_v17, %v60_v17 }
  0xd1   :  { %157 = vmatmul.mubr.msk.bf16.vlgmr.msra.gmra.mrb[0].mxu0 %vm43_vm0, %v61_v18 }
 0x1a4   :  { %v122_v20 = vpop.f32.mrb[0].mxu0 }
 0x1a5   :  { %v123_v21 = vadd.f32 %v145_v19, %v122_v20  ;;  %v158_v22 = vpop.f32.mrb[1].mxu0 }
 0x1a6   :  { %v125_v23 = vpop.f32.mrb[2].mxu0 }
 0x1a7   :  { %128 = vst [vmem:[#allocation7] sm:$0xff] %v123_v21  ;;  %v159_v24 = vpop.f32.mrb[3].mxu0 }
 0x1a8   :  { %226 = shalt.err (!%p223_p6)
}
 0x1a9   :  { %s227_s2 = scalar_lea.hbm %s322_s3, 128 }
 0x1aa   :  { %p228_p7 = scmp.ne.s32.totalorder %s322_s3, %s227_s2  ;;  %p231_p8 = scmp.lt.u32.totalorder %s227_s2, %s322_s3 }
 0x1ac   :  { %p233_p9 = pnand %p231_p8, %p228_p7 }
 0x1ae   :  { %236 = shalt.err (!%p233_p9)
}
 0x1af   :  { %138 = dma.vmem_to_hbm [thread:$0]  %s136_s12, 128, %s322_s3, [#allocation4]  }
 0x1b0   :  { %241 = dma.done.wait [#allocation4], 128  }
 0x1b1   :  { %242 = vsyncadd [#allocation4], 4294967168 }
 0x1b2   :  { %142 = vsyncpa [#allocation3], 1 }
 0x1b3   :  { %143 = vsyncpa [#allocation6], 1 }
 0x1b4   :  { %144 = vsyncpa [#allocation4], 1 }

</bundles_post_ra>
